<compile_context>
chip_gen: v6e
topology: v6e:2x2x1
jax: 0.10.0
libtpu: 0.0.40
codegen_flags: <defaults>
</compile_context>

<pallas_src>
import jax
import jax.numpy as jnp
from jax.experimental import pallas as pl
from jax.experimental.pallas import tpu as pltpu


def mf_mlp_kernel(idxu_ref, idxi_ref, tab_ref, w1_ref, b1_ref, w2_ref,
                  b2_ref, out_ref):
    # idxu_ref: (TB, 1) int32 user ids
    # idxi_ref: (TB, 1) int32 item ids already offset by n_users
    # tab_ref : (n_users + n_items, 2D) block-diagonal fused embedding table
    # w1_ref  : (2D, H), b1_ref: (1, H) f32, w2_ref: (1, H) f32
    # b2_ref  : (1, 1) f32 scalar in SMEM
    # out_ref : (1, TB) lane-dense output row for this batch tile
    tb = idxu_ref.shape[0]
    n_total = tab_ref.shape[0]

    # "Two-hot" select on the MXU: each row has a 1 at its user id and a 1 at
    # (n_users + item id); multiplying by the block-diagonal table yields the
    # lane-dense concat([u, i]) tile directly -> (TB, 2D).
    iota = jax.lax.broadcasted_iota(jnp.int32, (tb, n_total), 1)
    sel = ((iota == idxu_ref[...]) | (iota == idxi_ref[...])).astype(tab_ref.dtype)
    ui = jnp.dot(sel, tab_ref[...], preferred_element_type=jnp.float32)

    # Layer 1: single K=2D matmul (no concat, no half-width adds), f32 acc.
    h = jnp.dot(ui.astype(w1_ref.dtype), w1_ref[...],
                preferred_element_type=jnp.float32)
    h = jnp.maximum(h + b1_ref[...], 0.0)                         # (TB, H)

    # Layer 2: w2 (1,H) . h (TB,H) contracted over H -> (1, TB) lane-dense.
    y = jax.lax.dot_general(
        w2_ref[...], h,
        dimension_numbers=(((1,), (1,)), ((), ())),
        preferred_element_type=jnp.float32)                        # (1, TB)
    out_ref[...] = (y + b2_ref[0, 0]).astype(out_ref.dtype)


def mf_forward(indexes, user_emb, item_emb, w1, b1, w2, b2, *,
               tb=512, param_dtype=None):
    """indexes: int32 [2, B]; returns float32 [B, 1].

    param_dtype: dtype for the embedding tables and W1 on the MXU
      (e.g. jnp.bfloat16 on v6e/v7x). Accumulation / biases stay float32.
    """
    B = indexes.shape[1]
    D = user_emb.shape[1]
    H = w1.shape[1]
    n_users = user_emb.shape[0]
    n_items = item_emb.shape[0]
    n_total = n_users + n_items
    if param_dtype is None:
        param_dtype = user_emb.dtype

    # Batch tile: 512 by default, floored at 128 for small batches, always a
    # multiple of 128 so the (1, TB) output row is lane-dense.
    tb = max(128, (int(tb) // 128) * 128)
    tb_eff = min(tb, max(128, ((B + 127) // 128) * 128))
    num_tiles = pl.cdiv(B, tb_eff)
    b_pad = num_tiles * tb_eff

    # Two index columns; item ids pre-offset by n_users for the fused table.
    idx_u = indexes[0].astype(jnp.int32).reshape(B, 1)
    idx_i = indexes[1].astype(jnp.int32).reshape(B, 1) + n_users
    if b_pad != B:
        # Pad with valid row ids (user 0 / item 0); padded rows sliced below.
        idx_u = jnp.pad(idx_u, ((0, b_pad - B), (0, 0)))
        idx_i = jnp.pad(idx_i, ((0, b_pad - B), (0, 0)),
                        constant_values=n_users)

    # Block-diagonal fused table: rows [0, n_users) carry [u_emb, 0], rows
    # [n_users, n_total) carry [0, i_emb]; two_hot @ table == concat([u, i]).
    table = jnp.zeros((n_total, 2 * D), dtype=param_dtype)
    table = table.at[:n_users, :D].set(user_emb.astype(param_dtype))
    table = table.at[n_users:, D:].set(item_emb.astype(param_dtype))

    w1c = w1.astype(param_dtype)                                  # (2D, H)
    b1r = b1.reshape(1, H).astype(jnp.float32)                    # (1, H)
    w2r = w2.reshape(1, H).astype(jnp.float32)                    # (1, H)
    b2r = b2.reshape(1, 1).astype(jnp.float32)                    # (1, 1)

    out = pl.pallas_call(
        mf_mlp_kernel,
        out_shape=jax.ShapeDtypeStruct((num_tiles, tb_eff), jnp.float32),
        grid_spec=pltpu.PrefetchScalarGridSpec(
            num_scalar_prefetch=0,
            grid=(num_tiles,),
            in_specs=[
                pl.BlockSpec((tb_eff, 1), lambda t: (t, 0)),       # user ids
                pl.BlockSpec((tb_eff, 1), lambda t: (t, 0)),       # item ids
                pl.BlockSpec((n_total, 2 * D), lambda t: (0, 0)),  # fused table
                pl.BlockSpec((2 * D, H), lambda t: (0, 0)),        # W1
                pl.BlockSpec((1, H), lambda t: (0, 0)),            # b1
                pl.BlockSpec((1, H), lambda t: (0, 0)),            # W2 row
                pl.BlockSpec(memory_space=pltpu.MemorySpace.SMEM), # b2 scalar
            ],
            out_specs=pl.BlockSpec((1, tb_eff), lambda t: (t, 0)), # lane-dense
        ),
        compiler_params=pltpu.CompilerParams(
            dimension_semantics=("parallel",)),
    )(idx_u, idx_i, table, w1c, b1r, w2r, b2r)

    return out.reshape(b_pad, 1)[:B]


def _xavier_uniform(key, shape):
    fan_in, fan_out = shape[0], shape[1]
    bound = (6.0 / (fan_in + fan_out)) ** 0.5
    return jax.random.uniform(key, shape, jnp.float32, -bound, bound)


if __name__ == "__main__":
    # Small, forward-implied shapes.
    n_users, n_items = 32, 40
    embedding_dim = 64
    hidden = 128
    B = 8
    in_features = 2 * embedding_dim

    key = jax.random.PRNGKey(0)
    k_u, k_i, k_w1, k_b1, k_w2, k_b2, k_iu, k_ii = jax.random.split(key, 8)

    # Deterministic synthetic parameters (xavier_uniform like _init_weight_).
    user_emb = _xavier_uniform(k_u, (n_users, embedding_dim))
    item_emb = _xavier_uniform(k_i, (n_items, embedding_dim))
    w1 = _xavier_uniform(k_w1, (in_features, hidden))
    b1 = jax.random.uniform(k_b1, (1, hidden), jnp.float32, -0.05, 0.05)
    w2 = _xavier_uniform(k_w2, (hidden, 1))
    b2 = jax.random.uniform(k_b2, (1, 1), jnp.float32, -0.05, 0.05)

    # indexes[0] = user ids, indexes[1] = item ids.
    idx_users = jax.random.randint(k_iu, (B,), 0, n_users, jnp.int32)
    idx_items = jax.random.randint(k_ii, (B,), 0, n_items, jnp.int32)
    indexes = jnp.stack([idx_users, idx_items], axis=0)

    # Pure-JAX reference (mirrors the PyTorch forward).
    u = user_emb[indexes[0]]
    i = item_emb[indexes[1]]
    x = jnp.concatenate([u, i], axis=1)
    ref = jnp.maximum(x @ w1 + b1, 0.0) @ w2 + b2

    # f32 path: tight check.
    out = mf_forward(indexes, user_emb, item_emb, w1, b1, w2, b2)
    out = jax.block_until_ready(out)
    assert out.shape == (B, 1)
    assert jnp.allclose(out, ref, atol=1e-4, rtol=1e-4), (out, ref)

    # bf16-parameter path (v6e/v7x MXU optimization): compare against a
    # reference using the same bf16-rounded parameters, loose tolerance.
    out_bf16 = mf_forward(indexes, user_emb, item_emb, w1, b1, w2, b2,
                          param_dtype=jnp.bfloat16)
    out_bf16 = jax.block_until_ready(out_bf16)
    ue = user_emb.astype(jnp.bfloat16).astype(jnp.float32)
    ie = item_emb.astype(jnp.bfloat16).astype(jnp.float32)
    w1e = w1.astype(jnp.bfloat16).astype(jnp.float32)
    x_e = jnp.concatenate([ue[indexes[0]], ie[indexes[1]]], axis=1)
    ref_bf16 = jnp.maximum(x_e @ w1e + b1, 0.0) @ w2 + b2
    assert out_bf16.shape == (B, 1)
    assert jnp.allclose(out_bf16, ref_bf16, atol=2e-2, rtol=2e-2), \
        (out_bf16, ref_bf16)

    print("KERNEL_OK")
</pallas_src>

<mosaic_0001>
module attributes {stable_mosaic.version = 11 : i64} {
  func.func @mf_mlp_kernel(%arg0: i32, %arg1: memref<128x1xi32, #tpu.memory_space<vmem>>, %arg2: memref<128x1xi32, #tpu.memory_space<vmem>>, %arg3: memref<72x128xf32, #tpu.memory_space<vmem>>, %arg4: memref<128x128xf32, #tpu.memory_space<vmem>>, %arg5: memref<1x128xf32, #tpu.memory_space<vmem>>, %arg6: memref<1x128xf32, #tpu.memory_space<vmem>>, %arg7: memref<1x1xf32, #tpu.memory_space<smem>>, %arg8: memref<1x128xf32, #tpu.memory_space<vmem>>) attributes {dimension_semantics = [#tpu.dimension_semantics<parallel>], iteration_bounds = array<i64: 1>, scalar_prefetch = 0 : i64, scratch_operands = 0 : i64, tpu.core_type = #tpu.core_type<tc>, window_params = [{transform_indices = @transform_0, window_bounds = array<i64: 128, 1>}, {transform_indices = @transform_1, window_bounds = array<i64: 128, 1>}, {pipeline_mode = #tpu.pipeline_mode<synchronous>, transform_indices = @transform_2, window_bounds = array<i64: 72, 128>}, {pipeline_mode = #tpu.pipeline_mode<synchronous>, transform_indices = @transform_3, window_bounds = array<i64: 128, 128>}, {pipeline_mode = #tpu.pipeline_mode<synchronous>, transform_indices = @transform_4, window_bounds = array<i64: 1, 128>}, {pipeline_mode = #tpu.pipeline_mode<synchronous>, transform_indices = @transform_5, window_bounds = array<i64: 1, 128>}, {transform_indices = @transform_6, window_bounds = array<i64: 1, 1>}, {transform_indices = @transform_7, window_bounds = array<i64: 1, 128>}]} {
    %0 = tpu.iota {dimensions = array<i32: 1>} : vector<128x72xi32>
    %c0 = arith.constant 0 : index
    %c0_0 = arith.constant 0 : index
    %1 = vector.load %arg1[%c0, %c0_0] : memref<128x1xi32, #tpu.memory_space<vmem>>, vector<128x1xi32>
    %2 = vector.broadcast %1 : vector<128x1xi32> to vector<128x72xi32>
    %3 = arith.cmpi eq, %0, %2 : vector<128x72xi32>
    %c0_1 = arith.constant 0 : index
    %c0_2 = arith.constant 0 : index
    %4 = vector.load %arg2[%c0_1, %c0_2] : memref<128x1xi32, #tpu.memory_space<vmem>>, vector<128x1xi32>
    %5 = vector.broadcast %4 : vector<128x1xi32> to vector<128x72xi32>
    %6 = arith.cmpi eq, %0, %5 : vector<128x72xi32>
    %7 = arith.ori %3, %6 : vector<128x72xi1>
    %8 = arith.extui %7 : vector<128x72xi1> to vector<128x72xi32>
    %9 = arith.sitofp %8 : vector<128x72xi32> to vector<128x72xf32>
    %c0_3 = arith.constant 0 : index
    %c0_4 = arith.constant 0 : index
    %10 = vector.load %arg3[%c0_3, %c0_4] : memref<72x128xf32, #tpu.memory_space<vmem>>, vector<72x128xf32>
    %cst = arith.constant dense<0.000000e+00> : vector<128x128xf32>
    %11 = tpu.matmul %9, %10, %cst {dimension_numbers = #tpu.dot_dimension_numbers<[1], [0], [0], [1], [0, 0, 1, 1], [], []>} : vector<128x72xf32>, vector<72x128xf32>, vector<128x128xf32> -> vector<128x128xf32>
    %c0_5 = arith.constant 0 : index
    %c0_6 = arith.constant 0 : index
    %12 = vector.load %arg4[%c0_5, %c0_6] : memref<128x128xf32, #tpu.memory_space<vmem>>, vector<128x128xf32>
    %cst_7 = arith.constant dense<0.000000e+00> : vector<128x128xf32>
    %13 = tpu.matmul %11, %12, %cst_7 {dimension_numbers = #tpu.dot_dimension_numbers<[1], [0], [0], [1], [0, 0, 1, 1], [], []>} : vector<128x128xf32>, vector<128x128xf32>, vector<128x128xf32> -> vector<128x128xf32>
    %c0_8 = arith.constant 0 : index
    %c0_9 = arith.constant 0 : index
    %14 = vector.load %arg5[%c0_8, %c0_9] : memref<1x128xf32, #tpu.memory_space<vmem>>, vector<1x128xf32>
    %15 = vector.broadcast %14 : vector<1x128xf32> to vector<128x128xf32>
    %16 = arith.addf %13, %15 : vector<128x128xf32>
    %cst_10 = arith.constant 0.000000e+00 : f32
    %17 = vector.broadcast %cst_10 : f32 to vector<128x128xf32>
    %18 = arith.maximumf %16, %17 : vector<128x128xf32>
    %c0_11 = arith.constant 0 : index
    %c0_12 = arith.constant 0 : index
    %19 = vector.load %arg6[%c0_11, %c0_12] : memref<1x128xf32, #tpu.memory_space<vmem>>, vector<1x128xf32>
    %cst_13 = arith.constant dense<0.000000e+00> : vector<1x128xf32>
    %20 = tpu.matmul %19, %18, %cst_13 {dimension_numbers = #tpu.dot_dimension_numbers<[1], [1], [0], [0], [0, 0, 1, 0], [], []>} : vector<1x128xf32>, vector<128x128xf32>, vector<1x128xf32> -> vector<1x128xf32>
    %c0_14 = arith.constant 0 : index
    %c0_15 = arith.constant 0 : index
    %21 = memref.load %arg7[%c0_14, %c0_15] : memref<1x1xf32, #tpu.memory_space<smem>>
    %22 = vector.broadcast %21 : f32 to vector<1x128xf32>
    %23 = arith.addf %20, %22 : vector<1x128xf32>
    %c0_16 = arith.constant 0 : index
    %c0_17 = arith.constant 0 : index
    %24 = vector.load %arg8[%c0_16, %c0_17] : memref<1x128xf32, #tpu.memory_space<vmem>>, vector<1x128xf32>
    tpu.vector_store %arg8[%c0_16, %c0_17], %23 {strides = array<i32>} : memref<1x128xf32, #tpu.memory_space<vmem>>, vector<1x128xf32>,
    return
  }
  func.func @transform_0(%arg0: i32) -> (i32, i32) {
    %c0_i32 = arith.constant 0 : i32
    %c0_i32_0 = arith.constant 0 : i32
    return %arg0, %c0_i32 : i32, i32
  }
  func.func @transform_1(%arg0: i32) -> (i32, i32) {
    %c0_i32 = arith.constant 0 : i32
    %c0_i32_0 = arith.constant 0 : i32
    return %arg0, %c0_i32 : i32, i32
  }
  func.func @transform_2(%arg0: i32) -> (i32, i32) {
    %c0_i32 = arith.constant 0 : i32
    %c0_i32_0 = arith.constant 0 : i32
    %c0_i32_1 = arith.constant 0 : i32
    return %c0_i32, %c0_i32_0 : i32, i32
  }
  func.func @transform_3(%arg0: i32) -> (i32, i32) {
    %c0_i32 = arith.constant 0 : i32
    %c0_i32_0 = arith.constant 0 : i32
    %c0_i32_1 = arith.constant 0 : i32
    return %c0_i32, %c0_i32_0 : i32, i32
  }
  func.func @transform_4(%arg0: i32) -> (i32, i32) {
    %c0_i32 = arith.constant 0 : i32
    %c0_i32_0 = arith.constant 0 : i32
    %c0_i32_1 = arith.constant 0 : i32
    return %c0_i32, %c0_i32_0 : i32, i32
  }
  func.func @transform_5(%arg0: i32) -> (i32, i32) {
    %c0_i32 = arith.constant 0 : i32
    %c0_i32_0 = arith.constant 0 : i32
    %c0_i32_1 = arith.constant 0 : i32
    return %c0_i32, %c0_i32_0 : i32, i32
  }
  func.func @transform_6(%arg0: i32) -> (i32, i32) {
    %c0_i32 = arith.constant 0 : i32
    %c0_i32_0 = arith.constant 0 : i32
    %c0_i32_1 = arith.constant 0 : i32
    return %c0_i32, %c0_i32_0 : i32, i32
  }
  func.func @transform_7(%arg0: i32) -> (i32, i32) {
    %c0_i32 = arith.constant 0 : i32
    %c0_i32_0 = arith.constant 0 : i32
    return %arg0, %c0_i32 : i32, i32
  }
}

</mosaic_0001>

<bundles_post_ra>
// kernel: tpu_custom_call.1
= control target key start
LH: loop header
LB: loop body
LE: loop exit
PB: predicated region body
PF: predicated region fallthrough
CT: control target
= control target key end

     0   :  { %v981_v2 = vmov 0   ;;  %v982_v5 = vmov 0.0   ;;  %s1300_s0 = inlined_call_operand.vmem [shape: s32[128,1], index: 0, kind: input, shape index: {}]   ;;  %s1301_s1 = inlined_call_operand.vmem [shape: s32[128,1], index: 1, kind: input, shape index: {}]   ;;  %s1302_s2 = inlined_call_operand.vmem [shape: f32[72,128], index: 2, kind: input, shape index: {}]   ;;  %s1303_s3 = inlined_call_operand.vmem [shape: f32[128,128], index: 3, kind: input, shape index: {}]   ;;  %s1304_s4 = inlined_call_operand.vmem [shape: f32[1,128], index: 4, kind: input, shape index: {}]   ;;  %s1305_s5 = inlined_call_operand.vmem [shape: f32[1,128], index: 5, kind: input, shape index: {}]   ;;  %s1306_s6 = inlined_call_operand.<no memory space> [shape: f32[1,1], index: 6, kind: input, shape index: {}]   ;;  %s1307_s7 = inlined_call_operand.hbm [shape: f32[1,128], index: 7, kind: output, shape index: {}]  }
   0x1   :  { %v31_v0 = vld [vmem:[%s1300_s0 + $0x8] sm:$0xff]  ;;  %v30_v1 = vld [vmem:[%s1300_s0] sm:$0xff]  ;;  %958 = vset.pattern.permute.xlu1 %v981_v2  ;;  %957 = vset.pattern.permute.xlu0 %v981_v2  ;;  %v112_v6 = vld [vmem:[%s1301_s1 + $0x10] sm:$0xff] }
   0x2   :  { %50 = vperm.xlu1 %958, %v31_v0   ;;  %47 = vperm.xlu0 %957, %v30_v1   ;;  %v111_v3 = vld [vmem:[%s1301_s1 + $0x8] sm:$0xff]  ;;  %v110_v4 = vld [vmem:[%s1301_s1] sm:$0xff]  ;;  %v32_v7 = vld [vmem:[%s1300_s0 + $0x10] sm:$0xff] }
   0x3   :  { %918 = vmatprep.subr.mxu0 %v982_v5  ;;  %v246_v8 = vld [vmem:[%s1302_s2 + $0x40] sm:$0xff]  ;;  %v113_v9 = vld [vmem:[%s1301_s1 + $0x18] sm:$0xff]  ;;  %v244_v12 = vld [vmem:[%s1302_s2 + $0x30] sm:$0xff] }
   0x4   :  { %v33_v10 = vld [vmem:[%s1300_s0 + $0x18] sm:$0xff]  ;;  %820 = vmatprep.subr.mxu1 %v246_v8 }
   0x5   :  { %v245_v11 = vld [vmem:[%s1302_s2 + $0x38] sm:$0xff]  ;;  %821 = vmatpush3.msra.mxu1 %v246_v8 }
   0x6   :  { %130 = vperm.xlu1 %958, %v111_v3   ;;  %127 = vperm.xlu0 %957, %v110_v4  }
   0x7   :  { %822 = vmatprep.subr.mxu1 %v245_v11 }
   0xa   :  { %133 = vperm.xlu1 %958, %v112_v6   ;;  %53 = vperm.xlu0 %957, %v32_v7  }
   0xb   :  { %13 = vsyncpa [#allocation4], 0  ;;  %v114_v13 = vld [vmem:[%s1301_s1 + $0x20] sm:$0xff]  ;;  %823 = vmatpush3.msra.mxu1 %v245_v11  ;;  %v243_v15 = vld [vmem:[%s1302_s2 + $0x28] sm:$0xff]  ;;  %v28_v44 = vlaneseq  ;;  %vm247_vm5 = vcmask 588800   ;;  %s984_s20 = smov [#allocation3]  }
   0xc   :  { %v34_v14 = vld [vmem:[%s1300_s0 + $0x20] sm:$0xff]  ;;  %824 = vmatprep.subr.mxu1 %v244_v12  ;;  %v115_v17 = vld [vmem:[%s1301_s1 + $0x28] sm:$0xff]  ;;  %v241_v19 = vld [vmem:[%s1302_s2 + $0x18] sm:$0xff]  ;;  %s705_s21 = sshll.u32 %s984_s20, 4  ;;  %s706_s21 = int_to_ptr.vmem [resolvable:$true] %s705_s21 }
   0xd   :  { %825 = vmatpush3.msra.mxu1 %v244_v12  ;;  %v242_v16 = vld [vmem:[%s1302_s2 + $0x20] sm:$0xff]  ;;  %v35_v18 = vld [vmem:[%s1300_s0 + $0x28] sm:$0xff]  ;;  %v116_v20 = vld [vmem:[%s1301_s1 + $0x30] sm:$0xff]  ;;  %v1152_v47 = vand.u32 127, %v28_v44  ;;  %s959_s22 = scalar_lea.vmem %s706_s21, 16  ;;  %s963_s23 = scalar_lea.vmem %s706_s21, 32 }
   0xe   :  { %136 = vperm.xlu1 %958, %v113_v9   ;;  %56 = vperm.xlu0 %957, %v33_v10   ;;  %v36_v21 = vld [vmem:[%s1300_s0 + $0x30] sm:$0xff]  ;;  %v239_v23 = vld [vmem:[%s1302_s2 + $0x8] sm:$0xff]  ;;  %v117_v24 = vld [vmem:[%s1301_s1 + $0x38] sm:$0xff]  ;;  %p960_p0 = scmp.ne.s32.totalorder %s706_s21, %s959_s22  ;;  %p964_p1 = scmp.lt.s32.totalorder %s706_s21, %s706_s21 }
   0xf   :  { %826 = vmatprep.subr.mxu1 %v243_v15  ;;  %v240_v22 = vld [vmem:[%s1302_s2 + $0x10] sm:$0xff]  ;;  %v37_v25 = vld [vmem:[%s1300_s0 + $0x38] sm:$0xff]  ;;  %v238_v26 = vld [vmem:[%s1302_s2] sm:$0xff]  ;;  %p965_p2 = scmp.lt.s32.totalorder %s963_s23, %s959_s22 }
  0x10   :  { %827 = vmatpush3.msra.mxu1 %v243_v15  ;;  %v118_v27 = vld [vmem:[%s1301_s1 + $0x40] sm:$0xff]  ;;  %v119_v29 = vld [vmem:[%s1301_s1 + $0x48] sm:$0xff]  ;;  %v120_v31 = vld [vmem:[%s1301_s1 + $0x50] sm:$0xff] }
  0x11   :  { %828 = vmatprep.subr.mxu1 %v242_v16  ;;  %v38_v28 = vld [vmem:[%s1300_s0 + $0x40] sm:$0xff]  ;;  %v39_v30 = vld [vmem:[%s1300_s0 + $0x48] sm:$0xff]  ;;  %v40_v32 = vld [vmem:[%s1300_s0 + $0x50] sm:$0xff]  ;;  %p966_p3 = por %p965_p2, %p964_p1 }
  0x12   :  { %139 = vperm.xlu1 %958, %v114_v13   ;;  %59 = vperm.xlu0 %957, %v34_v14   ;;  %v121_v33 = vld [vmem:[%s1301_s1 + $0x58] sm:$0xff]  ;;  %v122_v35 = vld [vmem:[%s1301_s1 + $0x60] sm:$0xff]  ;;  %v123_v37 = vld [vmem:[%s1301_s1 + $0x68] sm:$0xff] }
  0x13   :  { %829 = vmatpush3.msra.mxu1 %v242_v16  ;;  %v41_v34 = vld [vmem:[%s1300_s0 + $0x58] sm:$0xff]  ;;  %v42_v36 = vld [vmem:[%s1300_s0 + $0x60] sm:$0xff]  ;;  %v43_v38 = vld [vmem:[%s1300_s0 + $0x68] sm:$0xff]  ;;  %p967_p4 = pnand %p966_p3, %p960_p0 }
  0x14   :  { %830 = vmatprep.subr.mxu1 %v241_v19  ;;  %v124_v39 = vld [vmem:[%s1301_s1 + $0x70] sm:$0xff]  ;;  %v125_v41 = vld [vmem:[%s1301_s1 + $0x78] sm:$0xff]  ;;  %v454_v56 = vld [vmem:[%s1303_s3 + $0x68] sm:$0xff] }
  0x15   :  { %831 = vmatpush3.msra.mxu1 %v241_v19  ;;  %v44_v40 = vld [vmem:[%s1300_s0 + $0x70] sm:$0xff]  ;;  %v45_v42 = vld [vmem:[%s1300_s0 + $0x78] sm:$0xff]  ;;  %v453_v59 = vld [vmem:[%s1303_s3 + $0x60] sm:$0xff] }
  0x16   :  { %142 = vperm.xlu1 %958, %v115_v17   ;;  %62 = vperm.xlu0 %957, %v35_v18   ;;  %v456_v43 = vld [vmem:[%s1303_s3 + $0x78] sm:$0xff]  ;;  %v455_v54 = vld [vmem:[%s1303_s3 + $0x70] sm:$0xff]  ;;  %v450_v2 = vld [vmem:[%s1303_s3 + $0x48] sm:$0xff] }
  0x17   :  { %832 = vmatprep.subr.mxu1 %v240_v22  ;;  %v452_v61 = vld [vmem:[%s1303_s3 + $0x58] sm:$0xff]  ;;  %v451_v0 = vld [vmem:[%s1303_s3 + $0x50] sm:$0xff]  ;;  %v449_v6 = vld [vmem:[%s1303_s3 + $0x40] sm:$0xff] }
  0x18   :  { %833 = vmatpush3.msra.mxu1 %v240_v22  ;;  %v448_v8 = vld [vmem:[%s1303_s3 + $0x38] sm:$0xff]  ;;  %v447_v11 = vld [vmem:[%s1303_s3 + $0x30] sm:$0xff]  ;;  %v446_v13 = vld [vmem:[%s1303_s3 + $0x28] sm:$0xff] }
  0x19   :  { %834 = vmatprep.subr.mxu1 %v239_v23  ;;  %v445_v16 = vld [vmem:[%s1303_s3 + $0x20] sm:$0xff]  ;;  %v444_v18 = vld [vmem:[%s1303_s3 + $0x18] sm:$0xff]  ;;  %v442_v44 = vld [vmem:[%s1303_s3 + $0x8] sm:$0xff] }
  0x1a   :  { %145 = vperm.xlu1 %958, %v116_v20   ;;  %65 = vperm.xlu0 %957, %v36_v21   ;;  %v443_v21 = vld [vmem:[%s1303_s3 + $0x10] sm:$0xff] }
  0x1b   :  { %835 = vmatpush3.msra.mxu1 %v239_v23 }
  0x1c   :  { %836 = vmatprep.subr.mxu1 %v238_v26 }
  0x1d   :  { %837 = vmatpush3.msra.mxu1 %v238_v26 }
  0x1e   :  { %148 = vperm.xlu1 %958, %v117_v24   ;;  %68 = vperm.xlu0 %957, %v37_v25  }
  0x1f   :  { %862 = vmatprep.subr.mxu1 %v456_v43 }
  0x22   :  { %151 = vperm.xlu1 %958, %v118_v27   ;;  %71 = vperm.xlu0 %957, %v38_v28  }
  0x26   :  { %154 = vperm.xlu1 %958, %v119_v29   ;;  %74 = vperm.xlu0 %957, %v39_v30  }
  0x2a   :  { %157 = vperm.xlu1 %958, %v120_v31   ;;  %77 = vperm.xlu0 %957, %v40_v32  }
  0x2e   :  { %160 = vperm.xlu1 %958, %v121_v33   ;;  %80 = vperm.xlu0 %957, %v41_v34  }
  0x32   :  { %163 = vperm.xlu1 %958, %v122_v35   ;;  %83 = vperm.xlu0 %957, %v42_v36  }
  0x36   :  { %166 = vperm.xlu1 %958, %v123_v37   ;;  %86 = vperm.xlu0 %957, %v43_v38  }
  0x3a   :  { %169 = vperm.xlu1 %958, %v124_v39   ;;  %89 = vperm.xlu0 %957, %v44_v40  }
  0x3e   :  { %172 = vperm.xlu1 %958, %v125_v41   ;;  %92 = vperm.xlu0 %957, %v45_v42  }
  0x7d   :  { %v51_v45 = vpop.permute.xlu1 %50  ;;  %v48_v46 = vpop.permute.xlu0 %47 }
  0x7e   :  { %vm95_vm0 = vcmp.eq.s32.totalorder %v1152_v47, %v51_v45  ;;  %vm94_vm3 = vcmp.eq.s32.totalorder %v1152_v47, %v48_v46  ;;  %v441_v45 = vld [vmem:[%s1303_s3] sm:$0xff] }
  0x81   :  { %v131_v48 = vpop.permute.xlu1 %130  ;;  %v128_v49 = vpop.permute.xlu0 %127 }
  0x82   :  { %vm175_vm1 = vcmp.eq.s32.totalorder %v1152_v47, %v131_v48  ;;  %vm174_vm2 = vcmp.eq.s32.totalorder %v1152_v47, %v128_v49 }
  0x83   :  { %vm191_vm4 = vmor %vm95_vm0, %vm175_vm1 }
  0x84   :  { %v714_v50 = vsel %vm191_vm4, 1.0, %v982_v5  ;;  %vm190_vm6 = vmor %vm94_vm3, %vm174_vm2 }
  0x85   :  { %v134_v51 = vpop.permute.xlu1 %133  ;;  %v54_v52 = vpop.permute.xlu0 %53  ;;  %v713_v53 = vsel %vm190_vm6, 1.0, %v982_v5 }
  0x86   :  { %vm176_vm7 = vcmp.eq.s32.totalorder %v1152_v47, %v134_v51  ;;  %vm96_vm8 = vcmp.eq.s32.totalorder %v1152_v47, %v54_v52  ;;  %838 = vmatprep.mubr.msk.f32.mxu1 %vm247_vm5, %v713_v53 }
  0x87   :  { %vm192_vm9 = vmor %vm96_vm8, %vm176_vm7  ;;  %839 = vmatmul.mubr.msk.f32.vlgmr.msra.gmra.mxu1 %vm247_vm5, %v714_v50 }
  0x88   :  { %v715_v55 = vsel %vm192_vm9, 1.0, %v982_v5  ;;  %863 = vmatpush3.msra.mxu1 %v456_v43 }
  0x89   :  { %v137_v57 = vpop.permute.xlu1 %136  ;;  %v57_v58 = vpop.permute.xlu0 %56  ;;  %841 = vmatprep.mubr.msk.f32.mxu1 %vm247_vm5, %v715_v55  ;;  %864 = vmatprep.subr.mxu1 %v455_v54 }
  0x8a   :  { %vm177_vm10 = vcmp.eq.s32.totalorder %v1152_v47, %v137_v57  ;;  %vm97_vm11 = vcmp.eq.s32.totalorder %v1152_v47, %v57_v58  ;;  %865 = vmatpush3.msra.mxu1 %v455_v54 }
  0x8b   :  { %vm193_vm12 = vmor %vm97_vm11, %vm177_vm10  ;;  %866 = vmatprep.subr.mxu1 %v454_v56 }
  0x8c   :  { %v716_v60 = vsel %vm193_vm12, 1.0, %v982_v5  ;;  %867 = vmatpush3.msra.mxu1 %v454_v56 }
  0x8d   :  { %v140_v62 = vpop.permute.xlu1 %139  ;;  %v60_v63 = vpop.permute.xlu0 %59  ;;  %842 = vmatmul.mubr.msk.f32.gmra.mxu1 %vm247_vm5, %v716_v60  ;;  %868 = vmatprep.subr.mxu1 %v453_v59 }
  0x8e   :  { %vm178_vm13 = vcmp.eq.s32.totalorder %v1152_v47, %v140_v62  ;;  %vm98_vm14 = vcmp.eq.s32.totalorder %v1152_v47, %v60_v63  ;;  %869 = vmatpush3.msra.mxu1 %v453_v59 }
  0x8f   :  { %vm194_vm15 = vmor %vm98_vm14, %vm178_vm13  ;;  %870 = vmatprep.subr.mxu1 %v452_v61 }
  0x90   :  { %v717_v1 = vsel %vm194_vm15, 1.0, %v982_v5  ;;  %871 = vmatpush3.msra.mxu1 %v452_v61 }
  0x91   :  { %v143_v3 = vpop.permute.xlu1 %142  ;;  %v63_v4 = vpop.permute.xlu0 %62  ;;  %844 = vmatprep.mubr.msk.f32.mxu1 %vm247_vm5, %v717_v1  ;;  %872 = vmatprep.subr.mxu1 %v451_v0 }
  0x92   :  { %vm179_vm0 = vcmp.eq.s32.totalorder %v1152_v47, %v143_v3  ;;  %vm99_vm1 = vcmp.eq.s32.totalorder %v1152_v47, %v63_v4  ;;  %873 = vmatpush3.msra.mxu1 %v451_v0 }
  0x93   :  { %vm195_vm2 = vmor %vm99_vm1, %vm179_vm0  ;;  %874 = vmatprep.subr.mxu1 %v450_v2 }
  0x94   :  { %v718_v7 = vsel %vm195_vm2, 1.0, %v982_v5  ;;  %875 = vmatpush3.msra.mxu1 %v450_v2 }
  0x95   :  { %v146_v9 = vpop.permute.xlu1 %145  ;;  %v66_v10 = vpop.permute.xlu0 %65  ;;  %845 = vmatmul.mubr.msk.f32.gmra.mxu1 %vm247_vm5, %v718_v7  ;;  %876 = vmatprep.subr.mxu1 %v449_v6 }
  0x96   :  { %vm180_vm3 = vcmp.eq.s32.totalorder %v1152_v47, %v146_v9  ;;  %vm100_vm4 = vcmp.eq.s32.totalorder %v1152_v47, %v66_v10  ;;  %877 = vmatpush3.msra.mxu1 %v449_v6 }
  0x97   :  { %vm196_vm6 = vmor %vm100_vm4, %vm180_vm3  ;;  %878 = vmatprep.subr.mxu1 %v448_v8 }
  0x98   :  { %v719_v12 = vsel %vm196_vm6, 1.0, %v982_v5  ;;  %879 = vmatpush3.msra.mxu1 %v448_v8 }
  0x99   :  { %v149_v14 = vpop.permute.xlu1 %148  ;;  %v69_v15 = vpop.permute.xlu0 %68  ;;  %847 = vmatprep.mubr.msk.f32.mxu1 %vm247_vm5, %v719_v12  ;;  %880 = vmatprep.subr.mxu1 %v447_v11 }
  0x9a   :  { %vm181_vm7 = vcmp.eq.s32.totalorder %v1152_v47, %v149_v14  ;;  %vm101_vm8 = vcmp.eq.s32.totalorder %v1152_v47, %v69_v15  ;;  %881 = vmatpush3.msra.mxu1 %v447_v11 }
  0x9b   :  { %vm197_vm9 = vmor %vm101_vm8, %vm181_vm7  ;;  %882 = vmatprep.subr.mxu1 %v446_v13 }
  0x9c   :  { %v720_v17 = vsel %vm197_vm9, 1.0, %v982_v5  ;;  %883 = vmatpush3.msra.mxu1 %v446_v13  ;;  %v745_v13 = vld [vmem:[%s1304_s4] ss:$0 sm:$0xff] }
  0x9d   :  { %v152_v19 = vpop.permute.xlu1 %151  ;;  %v72_v20 = vpop.permute.xlu0 %71  ;;  %848 = vmatmul.mubr.msk.f32.gmra.mxu1 %vm247_vm5, %v720_v17  ;;  %884 = vmatprep.subr.mxu1 %v445_v16 }
  0x9e   :  { %vm182_vm10 = vcmp.eq.s32.totalorder %v1152_v47, %v152_v19  ;;  %vm102_vm11 = vcmp.eq.s32.totalorder %v1152_v47, %v72_v20  ;;  %885 = vmatpush3.msra.mxu1 %v445_v16 }
  0x9f   :  { %vm198_vm12 = vmor %vm102_vm11, %vm182_vm10  ;;  %886 = vmatprep.subr.mxu1 %v444_v18 }
  0xa0   :  { %v721_v22 = vsel %vm198_vm12, 1.0, %v982_v5  ;;  %887 = vmatpush3.msra.mxu1 %v444_v18 }
  0xa1   :  { %v155_v23 = vpop.permute.xlu1 %154  ;;  %v75_v24 = vpop.permute.xlu0 %74  ;;  %850 = vmatprep.mubr.msk.f32.mxu1 %vm247_vm5, %v721_v22  ;;  %888 = vmatprep.subr.mxu1 %v443_v21 }
  0xa2   :  { %vm183_vm13 = vcmp.eq.s32.totalorder %v1152_v47, %v155_v23  ;;  %vm103_vm14 = vcmp.eq.s32.totalorder %v1152_v47, %v75_v24  ;;  %889 = vmatpush3.msra.mxu1 %v443_v21 }
  0xa3   :  { %vm199_vm15 = vmor %vm103_vm14, %vm183_vm13  ;;  %890 = vmatprep.subr.mxu1 %v442_v44 }
  0xa4   :  { %v722_v25 = vsel %vm199_vm15, 1.0, %v982_v5  ;;  %891 = vmatpush3.msra.mxu1 %v442_v44 }
  0xa5   :  { %v158_v26 = vpop.permute.xlu1 %157  ;;  %v78_v27 = vpop.permute.xlu0 %77  ;;  %851 = vmatmul.mubr.msk.f32.gmra.mxu1 %vm247_vm5, %v722_v25  ;;  %892 = vmatprep.subr.mxu1 %v441_v45 }
  0xa6   :  { %vm184_vm0 = vcmp.eq.s32.totalorder %v1152_v47, %v158_v26  ;;  %vm104_vm1 = vcmp.eq.s32.totalorder %v1152_v47, %v78_v27  ;;  %893 = vmatpush3.msra.mxu1 %v441_v45 }
  0xa7   :  { %vm200_vm2 = vmor %vm104_vm1, %vm184_vm0 }
  0xa8   :  { %v723_v28 = vsel %vm200_vm2, 1.0, %v982_v5 }
  0xa9   :  { %v161_v29 = vpop.permute.xlu1 %160  ;;  %v81_v30 = vpop.permute.xlu0 %80  ;;  %853 = vmatprep.mubr.msk.f32.mxu1 %vm247_vm5, %v723_v28 }
  0xaa   :  { %vm185_vm3 = vcmp.eq.s32.totalorder %v1152_v47, %v161_v29  ;;  %vm105_vm4 = vcmp.eq.s32.totalorder %v1152_v47, %v81_v30 }
  0xab   :  { %vm201_vm6 = vmor %vm105_vm4, %vm185_vm3 }
  0xac   :  { %v724_v31 = vsel %vm201_vm6, 1.0, %v982_v5 }
  0xad   :  { %v164_v32 = vpop.permute.xlu1 %163  ;;  %v84_v33 = vpop.permute.xlu0 %83  ;;  %854 = vmatmul.mubr.msk.f32.gmra.mxu1 %vm247_vm5, %v724_v31 }
  0xae   :  { %vm186_vm7 = vcmp.eq.s32.totalorder %v1152_v47, %v164_v32  ;;  %vm106_vm8 = vcmp.eq.s32.totalorder %v1152_v47, %v84_v33 }
  0xaf   :  { %vm202_vm9 = vmor %vm106_vm8, %vm186_vm7 }
  0xb0   :  { %v725_v34 = vsel %vm202_vm9, 1.0, %v982_v5 }
  0xb1   :  { %v167_v35 = vpop.permute.xlu1 %166  ;;  %v87_v36 = vpop.permute.xlu0 %86  ;;  %856 = vmatprep.mubr.msk.f32.mxu1 %vm247_vm5, %v725_v34 }
  0xb2   :  { %vm187_vm10 = vcmp.eq.s32.totalorder %v1152_v47, %v167_v35  ;;  %vm107_vm11 = vcmp.eq.s32.totalorder %v1152_v47, %v87_v36 }
  0xb3   :  { %vm203_vm12 = vmor %vm107_vm11, %vm187_vm10 }
  0xb4   :  { %v726_v37 = vsel %vm203_vm12, 1.0, %v982_v5 }
  0xb5   :  { %v170_v38 = vpop.permute.xlu1 %169  ;;  %v90_v39 = vpop.permute.xlu0 %89  ;;  %857 = vmatmul.mubr.msk.f32.gmra.mxu1 %vm247_vm5, %v726_v37 }
  0xb6   :  { %vm188_vm13 = vcmp.eq.s32.totalorder %v1152_v47, %v170_v38  ;;  %vm108_vm14 = vcmp.eq.s32.totalorder %v1152_v47, %v90_v39 }
  0xb7   :  { %vm204_vm15 = vmor %vm108_vm14, %vm188_vm13 }
  0xb8   :  { %v727_v40 = vsel %vm204_vm15, 1.0, %v982_v5 }
  0xb9   :  { %v173_v41 = vpop.permute.xlu1 %172  ;;  %v93_v42 = vpop.permute.xlu0 %92  ;;  %859 = vmatprep.mubr.msk.f32.mxu1 %vm247_vm5, %v727_v40 }
  0xba   :  { %vm189_vm0 = vcmp.eq.s32.totalorder %v1152_v47, %v173_v41  ;;  %vm109_vm1 = vcmp.eq.s32.totalorder %v1152_v47, %v93_v42 }
  0xbb   :  { %vm205_vm2 = vmor %vm109_vm1, %vm189_vm0 }
  0xbc   :  { %v728_v43 = vsel %vm205_vm2, 1.0, %v982_v5 }
  0xbd   :  { %860 = vmatmul.mubr.msk.f32.gmra.mxu1 %vm247_vm5, %v728_v43  ;;  %vm983_vm5 = vmmov 0  }
  0xbe   :  { %950 = vmatprep.mubr.msk.f32.mxu0 %vm983_vm5, %v982_v5 }
 0x147   :  { %v840_v46 = vpop.f32.mrf.mxu1 }
 0x149   :  { %v362_v48 = vpop.f32.mrf.mxu1 }
 0x14a   :  { %894 = vmatprep.mubr.f32.mxu1 %v362_v48 }
 0x14b   :  { %895 = vmatmul.mubr.f32.vlgmr.msra.gmra.mxu1 %v840_v46 }
 0x14d   :  { %v843_v47 = vpop.f32.mrf.mxu1 }
 0x14f   :  { %v372_v49 = vpop.f32.mrf.mxu1 }
 0x150   :  { %897 = vmatprep.mubr.f32.mxu1 %v372_v49  ;;  %v627_v49 = vstv %s1306_s6 }
 0x151   :  { %898 = vmatmul.mubr.f32.gmra.mxu1 %v843_v47  ;;  %v625_v47 = vld [vmem:[%s1305_s5] sm:$0x1] }
 0x155   :  { %v846_v50 = vpop.f32.mrf.mxu1 }
 0x157   :  { %v382_v51 = vpop.f32.mrf.mxu1 }
 0x158   :  { %900 = vmatprep.mubr.f32.mxu1 %v382_v51 }
 0x159   :  { %901 = vmatmul.mubr.f32.gmra.mxu1 %v846_v50 }
 0x15d   :  { %v849_v52 = vpop.f32.mrf.mxu1 }
 0x15f   :  { %v392_v53 = vpop.f32.mrf.mxu1 }
 0x160   :  { %903 = vmatprep.mubr.f32.mxu1 %v392_v53 }
 0x161   :  { %904 = vmatmul.mubr.f32.gmra.mxu1 %v849_v52 }
 0x165   :  { %v852_v54 = vpop.f32.mrf.mxu1 }
 0x167   :  { %v402_v55 = vpop.f32.mrf.mxu1 }
 0x168   :  { %906 = vmatprep.mubr.f32.mxu1 %v402_v55 }
 0x169   :  { %907 = vmatmul.mubr.f32.gmra.mxu1 %v852_v54 }
 0x16d   :  { %v855_v56 = vpop.f32.mrf.mxu1 }
 0x16f   :  { %v412_v57 = vpop.f32.mrf.mxu1 }
 0x170   :  { %909 = vmatprep.mubr.f32.mxu1 %v412_v57 }
 0x171   :  { %910 = vmatmul.mubr.f32.gmra.mxu1 %v855_v56 }
 0x175   :  { %v858_v58 = vpop.f32.mrf.mxu1 }
 0x177   :  { %v422_v59 = vpop.f32.mrf.mxu1 }
 0x178   :  { %912 = vmatprep.mubr.f32.mxu1 %v422_v59 }
 0x179   :  { %913 = vmatmul.mubr.f32.gmra.mxu1 %v858_v58 }
 0x17d   :  { %v861_v60 = vpop.f32.mrf.mxu1 }
 0x17f   :  { %v432_v61 = vpop.f32.mrf.mxu1 }
 0x180   :  { %915 = vmatprep.mubr.f32.mxu1 %v432_v61 }
 0x181   :  { %916 = vmatmul.mubr.f32.gmra.mxu1 %v861_v60 }
 0x20b   :  { %v1264_v62 = vpop.f32.mrf.mxu1 }
 0x20c   :  { %v536_v43 = vadd.f32 %v1264_v62, %v745_v13 }
 0x20d   :  { %v1266_v63 = vpop.f32.mrf.mxu1 }
 0x20e   :  { %v610_v45 = vmax.f32 %v536_v43, 0.0  ;;  %v531_v46 = vadd.f32 %v745_v13, %v1266_v63 }
 0x210   :  { %v609_v48 = vmax.f32 %v531_v46, 0.0 }
 0x211   :  { %v899_v0 = vpop.f32.mrf.mxu1 }
 0x212   :  { %v546_v39 = vadd.f32 %v899_v0, %v745_v13 }
 0x213   :  { %v1268_v1 = vpop.f32.mrf.mxu1 }
 0x214   :  { %v612_v41 = vmax.f32 %v546_v39, 0.0  ;;  %v541_v42 = vadd.f32 %v745_v13, %v1268_v1 }
 0x216   :  { %v611_v44 = vmax.f32 %v541_v42, 0.0 }
 0x219   :  { %v902_v2 = vpop.f32.mrf.mxu1 }
 0x21a   :  { %v556_v35 = vadd.f32 %v902_v2, %v745_v13 }
 0x21b   :  { %v550_v3 = vpop.f32.mrf.mxu1 }
 0x21c   :  { %v614_v37 = vmax.f32 %v556_v35, 0.0  ;;  %v551_v38 = vadd.f32 %v745_v13, %v550_v3 }
 0x21e   :  { %v613_v40 = vmax.f32 %v551_v38, 0.0 }
 0x221   :  { %v905_v4 = vpop.f32.mrf.mxu1 }
 0x222   :  { %v566_v31 = vadd.f32 %v905_v4, %v745_v13 }
 0x223   :  { %v560_v6 = vpop.f32.mrf.mxu1 }
 0x224   :  { %v616_v33 = vmax.f32 %v566_v31, 0.0  ;;  %v561_v34 = vadd.f32 %v745_v13, %v560_v6 }
 0x226   :  { %v615_v36 = vmax.f32 %v561_v34, 0.0 }
 0x229   :  { %v908_v7 = vpop.f32.mrf.mxu1 }
 0x22a   :  { %v576_v27 = vadd.f32 %v908_v7, %v745_v13 }
 0x22b   :  { %v570_v8 = vpop.f32.mrf.mxu1 }
 0x22c   :  { %v618_v29 = vmax.f32 %v576_v27, 0.0  ;;  %v571_v30 = vadd.f32 %v745_v13, %v570_v8 }
 0x22e   :  { %v617_v32 = vmax.f32 %v571_v30, 0.0 }
 0x231   :  { %v911_v9 = vpop.f32.mrf.mxu1 }
 0x232   :  { %v586_v23 = vadd.f32 %v911_v9, %v745_v13 }
 0x233   :  { %v580_v10 = vpop.f32.mrf.mxu1 }
 0x234   :  { %v620_v25 = vmax.f32 %v586_v23, 0.0  ;;  %v581_v26 = vadd.f32 %v745_v13, %v580_v10 }
 0x236   :  { %v619_v28 = vmax.f32 %v581_v26, 0.0 }
 0x239   :  { %v914_v11 = vpop.f32.mrf.mxu1 }
 0x23a   :  { %v596_v19 = vadd.f32 %v914_v11, %v745_v13 }
 0x23b   :  { %v590_v12 = vpop.f32.mrf.mxu1 }
 0x23c   :  { %v622_v21 = vmax.f32 %v596_v19, 0.0  ;;  %v591_v22 = vadd.f32 %v745_v13, %v590_v12 }
 0x23e   :  { %v621_v24 = vmax.f32 %v591_v22, 0.0 }
 0x241   :  { %v917_v14 = vpop.f32.mrf.mxu1 }
 0x242   :  { %v606_v15 = vadd.f32 %v917_v14, %v745_v13 }
 0x243   :  { %v600_v16 = vpop.f32.mrf.mxu1 }
 0x244   :  { %v624_v17 = vmax.f32 %v606_v15, 0.0  ;;  %v601_v18 = vadd.f32 %v745_v13, %v600_v16 }
 0x246   :  { %919 = vmatpush3.xpose.msra.mxu0 %v624_v17  ;;  %v623_v20 = vmax.f32 %v601_v18, 0.0 }
 0x247   :  { %920 = vmatprep.subr.mxu0 %v982_v5 }
 0x24a   :  { %921 = vmatpush3.xpose.msra.mxu0 %v623_v20 }
 0x24b   :  { %922 = vmatprep.subr.mxu0 %v982_v5 }
 0x24e   :  { %923 = vmatpush3.xpose.msra.mxu0 %v622_v21 }
 0x24f   :  { %924 = vmatprep.subr.mxu0 %v982_v5 }
 0x252   :  { %925 = vmatpush3.xpose.msra.mxu0 %v621_v24 }
 0x253   :  { %926 = vmatprep.subr.mxu0 %v982_v5 }
 0x256   :  { %927 = vmatpush3.xpose.msra.mxu0 %v620_v25 }
 0x257   :  { %928 = vmatprep.subr.mxu0 %v982_v5 }
 0x25a   :  { %929 = vmatpush3.xpose.msra.mxu0 %v619_v28 }
 0x25b   :  { %930 = vmatprep.subr.mxu0 %v982_v5 }
 0x25e   :  { %931 = vmatpush3.xpose.msra.mxu0 %v618_v29 }
 0x25f   :  { %932 = vmatprep.subr.mxu0 %v982_v5 }
 0x262   :  { %933 = vmatpush3.xpose.msra.mxu0 %v617_v32 }
 0x263   :  { %934 = vmatprep.subr.mxu0 %v982_v5 }
 0x266   :  { %935 = vmatpush3.xpose.msra.mxu0 %v616_v33 }
 0x267   :  { %936 = vmatprep.subr.mxu0 %v982_v5 }
 0x26a   :  { %937 = vmatpush3.xpose.msra.mxu0 %v615_v36 }
 0x26b   :  { %938 = vmatprep.subr.mxu0 %v982_v5 }
 0x26e   :  { %939 = vmatpush3.xpose.msra.mxu0 %v614_v37 }
 0x26f   :  { %940 = vmatprep.subr.mxu0 %v982_v5 }
 0x272   :  { %941 = vmatpush3.xpose.msra.mxu0 %v613_v40 }
 0x273   :  { %942 = vmatprep.subr.mxu0 %v982_v5 }
 0x276   :  { %943 = vmatpush3.xpose.msra.mxu0 %v612_v41 }
 0x277   :  { %944 = vmatprep.subr.mxu0 %v982_v5 }
 0x27a   :  { %945 = vmatpush3.xpose.msra.mxu0 %v611_v44 }
 0x27b   :  { %946 = vmatprep.subr.mxu0 %v982_v5 }
 0x27e   :  { %947 = vmatpush3.xpose.msra.mxu0 %v610_v45 }
 0x27f   :  { %948 = vmatprep.subr.mxu0 %v982_v5 }
 0x282   :  { %949 = vmatpush3.xpose.msra.mxu0 %v609_v48 }
 0x285   :  { %951 = vmatmul.mubr.f32.vlgmr.msra.gmra.mxu0 %v625_v47 }
 0x345   :  { %v694_v50 = vpop.f32.mrf.mxu0 }
 0x346   :  { %v695_v51 = vadd.f32 %v694_v50, %v627_v49 }
 0x347   :  { %v952_v52 = vpop.f32.mrf.mxu0 }
 0x348   :  { %698 = vst [vmem:[#allocation3] sm:$0x1] %v695_v51 }
 0x349   :  { %970 = shalt.err (!%p967_p4)
}
 0x34a   :  { %708 = dma.vmem_to_hbm [thread:$0]  %s706_s21, 16, %s1307_s7, [#allocation4]  }
 0x34b   :  { %979 = dma.done.wait [#allocation4], 16  }
 0x34c   :  { %980 = vsyncadd [#allocation4], 4294967280 }
 0x34d   :  { %712 = vsyncpa [#allocation4], 1 }

</bundles_post_ra>
